<compile_context>
chip_gen: v5e
topology: v5e:2x2
jax: 0.10.0
libtpu: 0.0.40
codegen_flags: <defaults>
</compile_context>

<pallas_src>
import functools
from collections import namedtuple

import jax
import jax.numpy as jnp
from jax.experimental import pallas as pl
from jax.experimental.pallas import tpu as pltpu

ConvParam = namedtuple("ConvParam", ["filters", "kernel_size"])
LayerParam = namedtuple(
    "LayerParam",
    ["mode", "w_slab", "w_f32", "out_channels", "kernel_size", "stride",
     "padding"])


def _round_up(x, m):
    return (x + m - 1) // m * m


def _pad_oc(oc):
    # 128 lanes exactly fill v5e's MXU N dim; wide layers (>=128 filters) are
    # padded to a multiple of 256 so v6e/v7x's 256-wide MXU is fully fed.
    return _round_up(oc, 256) if oc >= 128 else _round_up(oc, 128)


def _vmem_capacity_bytes():
    try:
        return int(pltpu.get_tpu_info().vmem_capacity_bytes)
    except Exception:
        return 64 << 20  # conservative fallback: v7x per-TensorCore VMEM


# ----------------------------------------------------------------------------
# Pallas kernel: single-shot GEMM (full K resident) + fused epilogue
# ----------------------------------------------------------------------------
def _conv_gemm_kernel(p_ref, w_ref, o_ref, *, mode, n_valid_rows,
                      negative_slope=0.2, eps=1e-5):
    # p_ref: (tm, Kp) bf16 patch tile; w_ref: (Kp, OCp) bf16, resident across
    # the whole grid; o_ref: (tm, OCp) bf16 (f32 for the final sigmoid layer).
    # MXU in bf16, accumulation and the whole epilogue in f32.
    acc = jnp.dot(p_ref[...], w_ref[...], preferred_element_type=jnp.float32)

    if mode == "lrelu":
        acc = jnp.where(acc > 0, acc, negative_slope * acc)
    elif mode == "bn_lrelu":
        # BatchNorm2d, training-mode batch stats (gamma=1, beta=0).  The M
        # axis is a single tile for this mode; zero-padded rows contribute
        # exactly zero to the sums and we divide by the true row count, so
        # padding never skews the statistics.
        inv_n = 1.0 / float(n_valid_rows)
        mean = jnp.sum(acc, axis=0, keepdims=True) * inv_n
        ex2 = jnp.sum(acc * acc, axis=0, keepdims=True) * inv_n
        var = jnp.maximum(ex2 - mean * mean, 0.0)   # biased variance
        acc = (acc - mean) * jax.lax.rsqrt(var + eps)
        acc = jnp.where(acc > 0, acc, negative_slope * acc)
    elif mode == "sigmoid":
        acc = jax.nn.sigmoid(acc)
    else:
        raise ValueError(mode)

    o_ref[...] = acc.astype(o_ref.dtype)


# ----------------------------------------------------------------------------
# One conv layer: NHWC bf16 in -> NHWC out, GEMM + fused epilogue in Pallas
# ----------------------------------------------------------------------------
def _conv_layer_nhwc(h, layer):
    n, hh, ww, c = h.shape
    kh = kw = layer.kernel_size
    s, p = layer.stride, layer.padding
    oh = (hh + 2 * p - kh) // s + 1
    ow = (ww + 2 * p - kw) // s + 1
    k_dim = kh * kw * c
    k_pad, ocp = layer.w_slab.shape
    assert k_pad == _round_up(k_dim, 128)

    # --- patch matrix (bf16); K zero-padding folded into the single concat ---
    # TODO(synk): fuse this gather into the kernel (strided DMA from pl.ANY).
    if p == 0 and s == 1 and kh == hh and kw == ww:
        # Receptive field == whole map (final DCGAN conv): plain reshape,
        # no strided gather and no HBM amplification at all.
        patches = h.reshape(n, k_dim)
        if k_pad > k_dim:
            patches = jnp.concatenate(
                [patches, jnp.zeros((n, k_pad - k_dim), h.dtype)], axis=-1)
    else:
        xp = h if p == 0 else jnp.pad(h, ((0, 0), (p, p), (p, p), (0, 0)))
        cols = [xp[:, ki:ki + s * oh:s, kj:kj + s * ow:s, :]
                for ki in range(kh) for kj in range(kw)]
        if k_pad > k_dim:
            cols.append(jnp.zeros((n, oh, ow, k_pad - k_dim), xp.dtype))
        patches = jnp.concatenate(cols, axis=-1).reshape(n * oh * ow, k_pad)

    rows = n * oh * ow
    rows16 = _round_up(rows, 16)               # bf16 sublane packing
    if layer.mode == "bn_lrelu":
        tm = rows16                            # batch stats need every row
    else:
        tm = min(rows16, 1024)                 # large tiles, fewer grid steps
    rows_pad = _round_up(rows16, tm)
    if rows_pad > rows:
        patches = jnp.pad(patches, ((0, rows_pad - rows), (0, 0)))
    if layer.mode == "bn_lrelu":
        assert rows_pad == tm, "BN layer must keep the whole M axis in one tile"

    out_dtype = jnp.float32 if layer.mode == "sigmoid" else jnp.bfloat16
    out_bytes = jnp.dtype(out_dtype).itemsize

    need = (2 * tm * k_pad * 2           # double-buffered bf16 patch tiles
            + k_pad * ocp * 2            # resident bf16 weight slab
            + 2 * tm * ocp * out_bytes   # double-buffered output tiles
            + tm * ocp * 4               # f32 GEMM / epilogue temporaries
            + (2 << 20))                 # headroom
    budget = _vmem_capacity_bytes() * 3 // 4
    assert need <= budget, (
        f"layer ({layer.mode}) needs ~{need >> 20} MiB VMEM > budget "
        f"{budget >> 20} MiB; see TODO(synk) two-pass BatchNorm")
    vmem_limit = int(min(max(need, 4 << 20), budget))

    out_flat = pl.pallas_call(
        functools.partial(_conv_gemm_kernel, mode=layer.mode,
                          n_valid_rows=rows),
        out_shape=jax.ShapeDtypeStruct((rows_pad, ocp), out_dtype),
        grid=(rows_pad // tm,),
        in_specs=[
            pl.BlockSpec((tm, k_pad), lambda m: (m, 0)),
            pl.BlockSpec((k_pad, ocp), lambda m: (0, 0)),   # resident slab
        ],
        out_specs=pl.BlockSpec((tm, ocp), lambda m: (m, 0)),
        compiler_params=pltpu.CompilerParams(
            dimension_semantics=("parallel",),
            vmem_limit_bytes=vmem_limit),
    )(patches, layer.w_slab)

    return out_flat[:rows, :layer.out_channels].reshape(
        n, oh, ow, layer.out_channels)


# ----------------------------------------------------------------------------
# Parameter construction (weight slabs prebuilt: lane-dense, bf16, K-padded)
# ----------------------------------------------------------------------------
def _make_layer(mode, w, stride, padding):
    oc, c, kh, kw = w.shape
    k_dim = kh * kw * c
    k_pad = _round_up(k_dim, 128)
    ocp = _pad_oc(oc)
    # (OC, C, KH, KW) -> (KH, KW, C, OC) -> (K, OC): matches patch (ki,kj,c) order.
    w2 = jnp.transpose(w, (2, 3, 1, 0)).reshape(k_dim, oc)
    slab = jnp.zeros((k_pad, ocp), jnp.float32).at[:k_dim, :oc].set(w2)
    return LayerParam(mode, slab.astype(jnp.bfloat16), w, oc, kh, stride, padding)


def init_discriminator_params(key, conv_params, in_channels):
    keys = jax.random.split(key, len(conv_params) + 1)

    def kaiming_normal(k, shape, a=0.2):
        fan_in = shape[1] * shape[2] * shape[3]
        gain = (2.0 / (1.0 + a * a)) ** 0.5
        std = gain / (fan_in ** 0.5)
        return std * jax.random.normal(k, shape, dtype=jnp.float32)

    def xavier_normal(k, shape):
        fan_in = shape[1] * shape[2] * shape[3]
        fan_out = shape[0] * shape[2] * shape[3]
        std = (2.0 / (fan_in + fan_out)) ** 0.5
        return std * jax.random.normal(k, shape, dtype=jnp.float32)

    layers = []
    p0 = conv_params[0]
    layers.append(_make_layer(
        "lrelu",
        kaiming_normal(keys[0], (p0.filters, in_channels,
                                 p0.kernel_size, p0.kernel_size)),
        stride=2, padding=1))
    for idx, (prev, cur) in enumerate(zip(conv_params[:-1], conv_params[1:])):
        layers.append(_make_layer(
            "bn_lrelu",
            kaiming_normal(keys[idx + 1], (cur.filters, prev.filters,
                                           cur.kernel_size, cur.kernel_size)),
            stride=2, padding=1))
    last = conv_params[-1]
    layers.append(_make_layer(
        "sigmoid",
        xavier_normal(keys[-1], (1, last.filters,
                                 last.kernel_size, last.kernel_size)),
        stride=1, padding=0))
    return layers


# ----------------------------------------------------------------------------
# Forward
# ----------------------------------------------------------------------------
def discriminator_forward(params, x_nchw):
    """x: (N, C, H, W) float32 -> same as PyTorch forward (sigmoid + squeeze)."""
    h = jnp.transpose(x_nchw, (0, 2, 3, 1)).astype(jnp.bfloat16)  # NHWC bf16
    for layer in params:
        h = _conv_layer_nhwc(h, layer)
    out = jnp.transpose(h, (0, 3, 1, 2))      # back to NCHW (f32 after sigmoid)
    # torch .squeeze(-1).squeeze(-1): drop trailing dims only if they are 1.
    if out.shape[-1] == 1:
        out = jnp.squeeze(out, axis=-1)
    if out.shape[-1] == 1:
        out = jnp.squeeze(out, axis=-1)
    return out


def _reference_forward(params, x_nchw):
    """Pure-JAX f32 reference for a tolerance-based parity check."""
    h = x_nchw
    for layer in params:
        h = jax.lax.conv_general_dilated(
            h, layer.w_f32, window_strides=(layer.stride, layer.stride),
            padding=[(layer.padding, layer.padding)] * 2,
            dimension_numbers=("NCHW", "OIHW", "NCHW"),
            precision=jax.lax.Precision.HIGHEST)
        if layer.mode == "bn_lrelu":
            mean = jnp.mean(h, axis=(0, 2, 3), keepdims=True)
            var = jnp.var(h, axis=(0, 2, 3), keepdims=True)   # biased
            h = (h - mean) * jax.lax.rsqrt(var + 1e-5)
        if layer.mode in ("lrelu", "bn_lrelu"):
            h = jnp.where(h > 0, h, 0.2 * h)
        elif layer.mode == "sigmoid":
            h = jax.nn.sigmoid(h)
    out = h
    if out.shape[-1] == 1:
        out = jnp.squeeze(out, axis=-1)
    if out.shape[-1] == 1:
        out = jnp.squeeze(out, axis=-1)
    return out


if __name__ == "__main__":
    key = jax.random.PRNGKey(0)
    k_w, k_x = jax.random.split(key)

    # Small config: 16x16 input, two strided convs (16->8->4), final 4x4 conv
    # reduces spatial to 1x1 so the squeeze yields shape (N, 1).
    conv_params = [ConvParam(filters=8, kernel_size=4),
                   ConvParam(filters=16, kernel_size=4)]
    in_channels = 4

    params = init_discriminator_params(k_w, conv_params, in_channels)
    x = jax.random.normal(k_x, (2, in_channels, 16, 16), dtype=jnp.float32)

    fwd = jax.jit(lambda xx: discriminator_forward(params, xx))
    out = jax.block_until_ready(fwd(x))

    assert out.shape == (2, 1), out.shape
    assert bool(jnp.all(jnp.isfinite(out)))
    assert bool(jnp.all((out >= 0.0) & (out <= 1.0)))   # sigmoid output

    # Tolerance-based parity vs. a pure-JAX f32 reference (bf16 MXU inputs ->
    # expect ~1e-2-level differences, comfortably inside this tolerance).
    ref = jax.block_until_ready(_reference_forward(params, x))
    max_err = float(jnp.max(jnp.abs(out.astype(jnp.float32) - ref)))
    assert max_err < 0.1, f"parity check failed: max abs err {max_err}"

    print("KERNEL_OK")
</pallas_src>

<mosaic_0001>
module attributes {stable_mosaic.version = 11 : i64} {
  func.func @_conv_gemm_kernel(%arg0: i32, %arg1: memref<128x128xbf16, #tpu.memory_space<vmem>>, %arg2: memref<128x128xbf16, #tpu.memory_space<vmem>>, %arg3: memref<128x128xbf16, #tpu.memory_space<vmem>>) attributes {dimension_semantics = [#tpu.dimension_semantics<parallel>], iteration_bounds = array<i64: 1>, scalar_prefetch = 0 : i64, scratch_operands = 0 : i64, tpu.core_type = #tpu.core_type<tc>, window_params = [{transform_indices = @transform_0, window_bounds = array<i64: 128, 128>}, {pipeline_mode = #tpu.pipeline_mode<synchronous>, transform_indices = @transform_1, window_bounds = array<i64: 128, 128>}, {transform_indices = @transform_2, window_bounds = array<i64: 128, 128>}]} {
    %c0 = arith.constant 0 : index
    %c0_0 = arith.constant 0 : index
    %0 = vector.load %arg1[%c0, %c0_0] : memref<128x128xbf16, #tpu.memory_space<vmem>>, vector<128x128xbf16>
    %c0_1 = arith.constant 0 : index
    %c0_2 = arith.constant 0 : index
    %1 = vector.load %arg2[%c0_1, %c0_2] : memref<128x128xbf16, #tpu.memory_space<vmem>>, vector<128x128xbf16>
    %cst = arith.constant dense<0.000000e+00> : vector<128x128xf32>
    %2 = tpu.matmul %0, %1, %cst {dimension_numbers = #tpu.dot_dimension_numbers<[1], [0], [0], [1], [0, 0, 1, 1], [], []>} : vector<128x128xbf16>, vector<128x128xbf16>, vector<128x128xf32> -> vector<128x128xf32>
    %cst_3 = arith.constant 0.000000e+00 : f32
    %3 = vector.broadcast %cst_3 : f32 to vector<128x128xf32>
    %4 = arith.cmpf ogt, %2, %3 : vector<128x128xf32>
    %cst_4 = arith.constant 2.000000e-01 : f32
    %5 = vector.broadcast %cst_4 : f32 to vector<128x128xf32>
    %6 = arith.mulf %5, %2 : vector<128x128xf32>
    %7 = arith.select %4, %2, %6 : vector<128x128xi1>, vector<128x128xf32>
    %8 = arith.truncf %7 : vector<128x128xf32> to vector<128x128xbf16>
    %c0_5 = arith.constant 0 : index
    %c0_6 = arith.constant 0 : index
    %9 = vector.load %arg3[%c0_5, %c0_6] : memref<128x128xbf16, #tpu.memory_space<vmem>>, vector<128x128xbf16>
    tpu.vector_store %arg3[%c0_5, %c0_6], %8 {strides = array<i32>} : memref<128x128xbf16, #tpu.memory_space<vmem>>, vector<128x128xbf16>,
    return
  }
  func.func @transform_0(%arg0: i32) -> (i32, i32) {
    %c0_i32 = arith.constant 0 : i32
    %c0_i32_0 = arith.constant 0 : i32
    return %arg0, %c0_i32 : i32, i32
  }
  func.func @transform_1(%arg0: i32) -> (i32, i32) {
    %c0_i32 = arith.constant 0 : i32
    %c0_i32_0 = arith.constant 0 : i32
    %c0_i32_1 = arith.constant 0 : i32
    return %c0_i32, %c0_i32_0 : i32, i32
  }
  func.func @transform_2(%arg0: i32) -> (i32, i32) {
    %c0_i32 = arith.constant 0 : i32
    %c0_i32_0 = arith.constant 0 : i32
    return %arg0, %c0_i32 : i32, i32
  }
}

module attributes {stable_mosaic.version = 11 : i64} {
  func.func @_conv_gemm_kernel(%arg0: i32, %arg1: memref<32x128xbf16, #tpu.memory_space<vmem>>, %arg2: memref<128x128xbf16, #tpu.memory_space<vmem>>, %arg3: memref<32x128xbf16, #tpu.memory_space<vmem>>) attributes {dimension_semantics = [#tpu.dimension_semantics<parallel>], iteration_bounds = array<i64: 1>, scalar_prefetch = 0 : i64, scratch_operands = 0 : i64, tpu.core_type = #tpu.core_type<tc>, window_params = [{transform_indices = @transform_0, window_bounds = array<i64: 32, 128>}, {pipeline_mode = #tpu.pipeline_mode<synchronous>, transform_indices = @transform_1, window_bounds = array<i64: 128, 128>}, {transform_indices = @transform_2, window_bounds = array<i64: 32, 128>}]} {
    %c0 = arith.constant 0 : index
    %c0_0 = arith.constant 0 : index
    %0 = vector.load %arg1[%c0, %c0_0] : memref<32x128xbf16, #tpu.memory_space<vmem>>, vector<32x128xbf16>
    %c0_1 = arith.constant 0 : index
    %c0_2 = arith.constant 0 : index
    %1 = vector.load %arg2[%c0_1, %c0_2] : memref<128x128xbf16, #tpu.memory_space<vmem>>, vector<128x128xbf16>
    %cst = arith.constant dense<0.000000e+00> : vector<32x128xf32>
    %2 = tpu.matmul %0, %1, %cst {dimension_numbers = #tpu.dot_dimension_numbers<[1], [0], [0], [1], [0, 0, 1, 1], [], []>} : vector<32x128xbf16>, vector<128x128xbf16>, vector<32x128xf32> -> vector<32x128xf32>
    %cst_3 = arith.constant dense<0.000000e+00> : vector<128xf32>
    %3 = vector.multi_reduction <add>, %2, %cst_3 [0] : vector<32x128xf32> to vector<128xf32>
    %4 = vector.shape_cast %3 : vector<128xf32> to vector<1x128xf32>
    %cst_4 = arith.constant 3.125000e-02 : f32
    %5 = vector.broadcast %cst_4 : f32 to vector<1x128xf32>
    %6 = arith.mulf %4, %5 : vector<1x128xf32>
    %7 = arith.mulf %2, %2 : vector<32x128xf32>
    %cst_5 = arith.constant dense<0.000000e+00> : vector<128xf32>
    %8 = vector.multi_reduction <add>, %7, %cst_5 [0] : vector<32x128xf32> to vector<128xf32>
    %9 = vector.shape_cast %8 : vector<128xf32> to vector<1x128xf32>
    %cst_6 = arith.constant 3.125000e-02 : f32
    %10 = vector.broadcast %cst_6 : f32 to vector<1x128xf32>
    %11 = arith.mulf %9, %10 : vector<1x128xf32>
    %12 = arith.mulf %6, %6 : vector<1x128xf32>
    %13 = arith.subf %11, %12 : vector<1x128xf32>
    %cst_7 = arith.constant 0.000000e+00 : f32
    %14 = vector.broadcast %cst_7 : f32 to vector<1x128xf32>
    %15 = arith.maximumf %13, %14 : vector<1x128xf32>
    %16 = vector.broadcast %6 : vector<1x128xf32> to vector<32x128xf32>
    %17 = arith.subf %2, %16 : vector<32x128xf32>
    %cst_8 = arith.constant 9.99999974E-6 : f32
    %18 = vector.broadcast %cst_8 : f32 to vector<1x128xf32>
    %19 = arith.addf %15, %18 : vector<1x128xf32>
    %20 = math.rsqrt %19 : vector<1x128xf32>
    %21 = vector.broadcast %20 : vector<1x128xf32> to vector<32x128xf32>
    %22 = arith.mulf %17, %21 : vector<32x128xf32>
    %cst_9 = arith.constant 0.000000e+00 : f32
    %23 = vector.broadcast %cst_9 : f32 to vector<32x128xf32>
    %24 = arith.cmpf ogt, %22, %23 : vector<32x128xf32>
    %cst_10 = arith.constant 2.000000e-01 : f32
    %25 = vector.broadcast %cst_10 : f32 to vector<32x128xf32>
    %26 = arith.mulf %25, %22 : vector<32x128xf32>
    %27 = arith.select %24, %22, %26 : vector<32x128xi1>, vector<32x128xf32>
    %28 = arith.truncf %27 : vector<32x128xf32> to vector<32x128xbf16>
    %c0_11 = arith.constant 0 : index
    %c0_12 = arith.constant 0 : index
    %29 = vector.load %arg3[%c0_11, %c0_12] : memref<32x128xbf16, #tpu.memory_space<vmem>>, vector<32x128xbf16>
    tpu.vector_store %arg3[%c0_11, %c0_12], %28 {strides = array<i32>} : memref<32x128xbf16, #tpu.memory_space<vmem>>, vector<32x128xbf16>,
    return
  }
  func.func @transform_0(%arg0: i32) -> (i32, i32) {
    %c0_i32 = arith.constant 0 : i32
    %c0_i32_0 = arith.constant 0 : i32
    return %arg0, %c0_i32 : i32, i32
  }
  func.func @transform_1(%arg0: i32) -> (i32, i32) {
    %c0_i32 = arith.constant 0 : i32
    %c0_i32_0 = arith.constant 0 : i32
    %c0_i32_1 = arith.constant 0 : i32
    return %c0_i32, %c0_i32_0 : i32, i32
  }
  func.func @transform_2(%arg0: i32) -> (i32, i32) {
    %c0_i32 = arith.constant 0 : i32
    %c0_i32_0 = arith.constant 0 : i32
    return %arg0, %c0_i32 : i32, i32
  }
}

module attributes {stable_mosaic.version = 11 : i64} {
  func.func @_conv_gemm_kernel(%arg0: i32, %arg1: memref<16x256xbf16, #tpu.memory_space<vmem>>, %arg2: memref<256x128xbf16, #tpu.memory_space<vmem>>, %arg3: memref<16x128xf32, #tpu.memory_space<vmem>>) attributes {dimension_semantics = [#tpu.dimension_semantics<parallel>], iteration_bounds = array<i64: 1>, scalar_prefetch = 0 : i64, scratch_operands = 0 : i64, tpu.core_type = #tpu.core_type<tc>, window_params = [{transform_indices = @transform_0, window_bounds = array<i64: 16, 256>}, {pipeline_mode = #tpu.pipeline_mode<synchronous>, transform_indices = @transform_1, window_bounds = array<i64: 256, 128>}, {transform_indices = @transform_2, window_bounds = array<i64: 16, 128>}]} {
    %c0 = arith.constant 0 : index
    %c0_0 = arith.constant 0 : index
    %0 = vector.load %arg1[%c0, %c0_0] : memref<16x256xbf16, #tpu.memory_space<vmem>>, vector<16x256xbf16>
    %c0_1 = arith.constant 0 : index
    %c0_2 = arith.constant 0 : index
    %1 = vector.load %arg2[%c0_1, %c0_2] : memref<256x128xbf16, #tpu.memory_space<vmem>>, vector<256x128xbf16>
    %cst = arith.constant dense<0.000000e+00> : vector<16x128xf32>
    %2 = tpu.matmul %0, %1, %cst {dimension_numbers = #tpu.dot_dimension_numbers<[1], [0], [0], [1], [0, 0, 1, 1], [], []>} : vector<16x256xbf16>, vector<256x128xbf16>, vector<16x128xf32> -> vector<16x128xf32>
    %3 = arith.negf %2 : vector<16x128xf32>
    %4 = math.exp %3 : vector<16x128xf32>
    %cst_3 = arith.constant 1.000000e+00 : f32
    %5 = vector.broadcast %cst_3 : f32 to vector<16x128xf32>
    %6 = arith.addf %5, %4 : vector<16x128xf32>
    %7 = arith.divf %5, %6 : vector<16x128xf32>
    %c0_4 = arith.constant 0 : index
    %c0_5 = arith.constant 0 : index
    %8 = vector.load %arg3[%c0_4, %c0_5] : memref<16x128xf32, #tpu.memory_space<vmem>>, vector<16x128xf32>
    tpu.vector_store %arg3[%c0_4, %c0_5], %7 {strides = array<i32>} : memref<16x128xf32, #tpu.memory_space<vmem>>, vector<16x128xf32>,
    return
  }
  func.func @transform_0(%arg0: i32) -> (i32, i32) {
    %c0_i32 = arith.constant 0 : i32
    %c0_i32_0 = arith.constant 0 : i32
    return %arg0, %c0_i32 : i32, i32
  }
  func.func @transform_1(%arg0: i32) -> (i32, i32) {
    %c0_i32 = arith.constant 0 : i32
    %c0_i32_0 = arith.constant 0 : i32
    %c0_i32_1 = arith.constant 0 : i32
    return %c0_i32, %c0_i32_0 : i32, i32
  }
  func.func @transform_2(%arg0: i32) -> (i32, i32) {
    %c0_i32 = arith.constant 0 : i32
    %c0_i32_0 = arith.constant 0 : i32
    return %arg0, %c0_i32 : i32, i32
  }
}

</mosaic_0001>

<bundles_post_ra>
// kernel: _lambda_.3
= control target key start
LH: loop header
LB: loop body
LE: loop exit
PB: predicated region body
PF: predicated region fallthrough
CT: control target
= control target key end

     0   :  { %s510_s1 = inlined_call_operand.vmem [shape: bf16[128,128], index: 1, kind: input, shape index: {}]   ;;  %s511_s0 = inlined_call_operand.vmem [shape: bf16[128,128], index: 0, kind: input, shape index: {}]   ;;  %s512_s2 = inlined_call_operand.vmem [shape: bf16[128,128], index: 2, kind: output, shape index: {}]  }
   0x1   :  { %v351_v0 = vld [vmem:[%s510_s1 + $0x38] sm:$0xff]  ;;  %v350_v1 = vld [vmem:[%s510_s1 + $0x30] sm:$0xff]  ;;  %v349_v2 = vld [vmem:[%s510_s1 + $0x28] sm:$0xff] }
   0x2   :  { %139 = vmatpush.bf16.msra.mxu0 %v351_v0  ;;  %399 = vmatpush.bf16.msra.mxu1 %v351_v0  ;;  %v348_v3 = vld [vmem:[%s510_s1 + $0x20] sm:$0xff]  ;;  %v347_v4 = vld [vmem:[%s510_s1 + $0x18] sm:$0xff]  ;;  %v346_v5 = vld [vmem:[%s510_s1 + $0x10] sm:$0xff] }
   0x3   :  { %400 = vmatpush.bf16.msra.mxu2 %v351_v0  ;;  %401 = vmatpush.bf16.msra.mxu3 %v351_v0  ;;  %v345_v6 = vld [vmem:[%s510_s1 + $0x8] sm:$0xff]  ;;  %v344_v7 = vld [vmem:[%s510_s1] sm:$0xff]  ;;  %v338_v9 = vld [vmem:[%s511_s0 + $0x10] sm:$0xff] }
   0x4   :  { %v336_v8 = vld [vmem:[%s511_s0] sm:$0xff]  ;;  %v342_v11 = vld [vmem:[%s511_s0 + $0x30] sm:$0xff]  ;;  %v337_v12 = vld [vmem:[%s511_s0 + $0x8] sm:$0xff] }
   0x5   :  { %v340_v10 = vld [vmem:[%s511_s0 + $0x20] sm:$0xff]  ;;  %v339_v13 = vld [vmem:[%s511_s0 + $0x18] sm:$0xff]  ;;  %v341_v14 = vld [vmem:[%s511_s0 + $0x28] sm:$0xff] }
   0x6   :  { %140 = vmatpush.bf16.msra.mxu0 %v350_v1  ;;  %402 = vmatpush.bf16.msra.mxu1 %v350_v1  ;;  %v343_v15 = vld [vmem:[%s511_s0 + $0x38] sm:$0xff] }
   0x7   :  { %403 = vmatpush.bf16.msra.mxu2 %v350_v1  ;;  %404 = vmatpush.bf16.msra.mxu3 %v350_v1 }
   0xa   :  { %141 = vmatpush.bf16.msra.mxu0 %v349_v2  ;;  %405 = vmatpush.bf16.msra.mxu1 %v349_v2 }
   0xb   :  { %406 = vmatpush.bf16.msra.mxu2 %v349_v2  ;;  %407 = vmatpush.bf16.msra.mxu3 %v349_v2 }
   0xe   :  { %142 = vmatpush.bf16.msra.mxu0 %v348_v3  ;;  %408 = vmatpush.bf16.msra.mxu1 %v348_v3 }
   0xf   :  { %409 = vmatpush.bf16.msra.mxu2 %v348_v3  ;;  %410 = vmatpush.bf16.msra.mxu3 %v348_v3 }
  0x12   :  { %143 = vmatpush.bf16.msra.mxu0 %v347_v4  ;;  %411 = vmatpush.bf16.msra.mxu1 %v347_v4 }
  0x13   :  { %412 = vmatpush.bf16.msra.mxu2 %v347_v4  ;;  %413 = vmatpush.bf16.msra.mxu3 %v347_v4 }
  0x16   :  { %144 = vmatpush.bf16.msra.mxu0 %v346_v5  ;;  %414 = vmatpush.bf16.msra.mxu1 %v346_v5 }
  0x17   :  { %415 = vmatpush.bf16.msra.mxu2 %v346_v5  ;;  %416 = vmatpush.bf16.msra.mxu3 %v346_v5 }
  0x1a   :  { %145 = vmatpush.bf16.msra.mxu0 %v345_v6  ;;  %417 = vmatpush.bf16.msra.mxu1 %v345_v6 }
  0x1b   :  { %418 = vmatpush.bf16.msra.mxu2 %v345_v6  ;;  %419 = vmatpush.bf16.msra.mxu3 %v345_v6 }
  0x1e   :  { %146 = vmatpush.bf16.msra.mxu0 %v344_v7  ;;  %420 = vmatpush.bf16.msra.mxu1 %v344_v7 }
  0x1f   :  { %421 = vmatpush.bf16.msra.mxu2 %v344_v7  ;;  %422 = vmatpush.bf16.msra.mxu3 %v344_v7 }
  0x21   :  { %147 = vmatmul.bf16.vlgmr.msra.gmra.mxu0 %v336_v8  ;;  %157 = vmatmul.bf16.vlgmr.msra.gmra.mxu1 %v338_v9 }
  0x22   :  { %167 = vmatmul.bf16.vlgmr.msra.gmra.mxu2 %v340_v10  ;;  %177 = vmatmul.bf16.vlgmr.msra.gmra.mxu3 %v342_v11 }
  0x31   :  { %152 = vmatmul.bf16.gmra.mxu0 %v337_v12  ;;  %162 = vmatmul.bf16.gmra.mxu1 %v339_v13 }
  0x32   :  { %172 = vmatmul.bf16.gmra.mxu2 %v341_v14  ;;  %182 = vmatmul.bf16.gmra.mxu3 %v343_v15 }
  0x9e   :  { %v148_v16 = vpop.f32.mrf.mxu0  ;;  %v158_v17 = vpop.f32.mrf.mxu1 }
  0x9f   :  { %v204_v18 = vmul.f32 0.2, %v148_v16  ;;  %v208_v19 = vmul.f32 0.2, %v158_v17  ;;  %vm188_vm0 = vcmp.gt.f32.partialorder %v148_v16, 0.0  ;;  %vm192_vm1 = vcmp.gt.f32.partialorder %v158_v17, 0.0 }
  0xa1   :  { %v220_v26 = vsel %vm188_vm0, %v148_v16, %v204_v18  ;;  %v224_v27 = vsel %vm192_vm1, %v158_v17, %v208_v19 }
  0xa5   :  { %v168_v20 = vpop.f32.mrf.mxu2  ;;  %v178_v21 = vpop.f32.mrf.mxu3 }
  0xa6   :  { %v150_v22 = vpop.f32.mrf.mxu0  ;;  %v160_v23 = vpop.f32.mrf.mxu1  ;;  %v212_v32 = vmul.f32 0.2, %v168_v20  ;;  %v216_v33 = vmul.f32 0.2, %v178_v21  ;;  %vm196_vm4 = vcmp.gt.f32.partialorder %v168_v20, 0.0  ;;  %vm200_vm5 = vcmp.gt.f32.partialorder %v178_v21, 0.0 }
  0xa7   :  { %vm189_vm2 = vcmp.gt.f32.partialorder %v150_v22, 0.0  ;;  %v205_v24 = vmul.f32 0.2, %v150_v22  ;;  %vm193_vm3 = vcmp.gt.f32.partialorder %v160_v23, 0.0  ;;  %v209_v25 = vmul.f32 0.2, %v160_v23 }
  0xa8   :  { %v228_v40 = vsel %vm196_vm4, %v168_v20, %v212_v32  ;;  %v232_v41 = vsel %vm200_vm5, %v178_v21, %v216_v33 }
  0xa9   :  { %v221_v28 = vsel %vm189_vm2, %v150_v22, %v205_v24  ;;  %v225_v29 = vsel %vm193_vm3, %v160_v23, %v209_v25 }
  0xaa   :  { %v355_v30 = vpack.c.bf16 %v221_v28, %v220_v26  ;;  %v365_v31 = vpack.c.bf16 %v225_v29, %v224_v27 }
  0xac   :  { %356 = vst [vmem:[%s512_s2] sm:$0xff] %v355_v30  }
  0xad   :  { %393 = vst [vmem:[%s512_s2 + $0x10] sm:$0xff] %v365_v31   ;;  %v170_v34 = vpop.f32.mrf.mxu2  ;;  %v180_v35 = vpop.f32.mrf.mxu3 }
  0xae   :  { %vm197_vm6 = vcmp.gt.f32.partialorder %v170_v34, 0.0  ;;  %v213_v36 = vmul.f32 0.2, %v170_v34  ;;  %vm201_vm7 = vcmp.gt.f32.partialorder %v180_v35, 0.0  ;;  %v217_v37 = vmul.f32 0.2, %v180_v35  ;;  %v153_v38 = vpop.f32.mrf.mxu0  ;;  %v163_v39 = vpop.f32.mrf.mxu1 }
  0xaf   :  { %v206_v46 = vmul.f32 0.2, %v153_v38  ;;  %v210_v47 = vmul.f32 0.2, %v163_v39  ;;  %vm190_vm8 = vcmp.gt.f32.partialorder %v153_v38, 0.0  ;;  %vm194_vm9 = vcmp.gt.f32.partialorder %v163_v39, 0.0 }
  0xb0   :  { %v229_v42 = vsel %vm197_vm6, %v170_v34, %v213_v36  ;;  %v233_v43 = vsel %vm201_vm7, %v180_v35, %v217_v37 }
  0xb1   :  { %v375_v44 = vpack.c.bf16 %v229_v42, %v228_v40  ;;  %v385_v45 = vpack.c.bf16 %v233_v43, %v232_v41  ;;  %v222_v54 = vsel %vm190_vm8, %v153_v38, %v206_v46  ;;  %v226_v55 = vsel %vm194_vm9, %v163_v39, %v210_v47 }
  0xb3   :  { %395 = vst [vmem:[%s512_s2 + $0x20] sm:$0xff] %v375_v44  }
  0xb4   :  { %397 = vst [vmem:[%s512_s2 + $0x30] sm:$0xff] %v385_v45  }
  0xb5   :  { %v173_v48 = vpop.f32.mrf.mxu2  ;;  %v183_v49 = vpop.f32.mrf.mxu3 }
  0xb6   :  { %v155_v50 = vpop.f32.mrf.mxu0  ;;  %v165_v51 = vpop.f32.mrf.mxu1  ;;  %v214_v60 = vmul.f32 0.2, %v173_v48  ;;  %v218_v61 = vmul.f32 0.2, %v183_v49  ;;  %vm198_vm12 = vcmp.gt.f32.partialorder %v173_v48, 0.0  ;;  %vm202_vm13 = vcmp.gt.f32.partialorder %v183_v49, 0.0 }
  0xb7   :  { %vm191_vm10 = vcmp.gt.f32.partialorder %v155_v50, 0.0  ;;  %v207_v52 = vmul.f32 0.2, %v155_v50  ;;  %vm195_vm11 = vcmp.gt.f32.partialorder %v165_v51, 0.0  ;;  %v211_v53 = vmul.f32 0.2, %v165_v51 }
  0xb8   :  { %v230_v2 = vsel %vm198_vm12, %v173_v48, %v214_v60  ;;  %v234_v3 = vsel %vm202_vm13, %v183_v49, %v218_v61 }
  0xb9   :  { %v223_v56 = vsel %vm191_vm10, %v155_v50, %v207_v52  ;;  %v227_v57 = vsel %vm195_vm11, %v165_v51, %v211_v53 }
  0xba   :  { %v360_v58 = vpack.c.bf16 %v223_v56, %v222_v54  ;;  %v370_v59 = vpack.c.bf16 %v227_v57, %v226_v55 }
  0xbc   :  { %392 = vst [vmem:[%s512_s2 + $0x8] sm:$0xff] %v360_v58  }
  0xbd   :  { %394 = vst [vmem:[%s512_s2 + $0x18] sm:$0xff] %v370_v59   ;;  %v175_v62 = vpop.f32.mrf.mxu2  ;;  %v185_v63 = vpop.f32.mrf.mxu3 }
  0xbe   :  { %vm199_vm14 = vcmp.gt.f32.partialorder %v175_v62, 0.0  ;;  %v215_v0 = vmul.f32 0.2, %v175_v62  ;;  %vm203_vm15 = vcmp.gt.f32.partialorder %v185_v63, 0.0  ;;  %v219_v1 = vmul.f32 0.2, %v185_v63 }
  0xc0   :  { %v231_v4 = vsel %vm199_vm14, %v175_v62, %v215_v0  ;;  %v235_v5 = vsel %vm203_vm15, %v185_v63, %v219_v1 }
  0xc1   :  { %v380_v6 = vpack.c.bf16 %v231_v4, %v230_v2  ;;  %v390_v7 = vpack.c.bf16 %v235_v5, %v234_v3 }
  0xc3   :  { %396 = vst [vmem:[%s512_s2 + $0x28] sm:$0xff] %v380_v6  }
  0xc4   :  { %398 = vst [vmem:[%s512_s2 + $0x38] sm:$0xff] %v390_v7  }

// kernel: _lambda_.4
= control target key start
LH: loop header
LB: loop body
LE: loop exit
PB: predicated region body
PF: predicated region fallthrough
CT: control target
= control target key end

     0   :  { %s302_s1 = inlined_call_operand.vmem [shape: bf16[128,128], index: 1, kind: input, shape index: {}]   ;;  %s303_s0 = inlined_call_operand.vmem [shape: bf16[32,128], index: 0, kind: input, shape index: {}]   ;;  %s304_s2 = inlined_call_operand.vmem [shape: bf16[32,128], index: 2, kind: output, shape index: {}]  }
   0x1   :  { %v229_v0 = vld [vmem:[%s302_s1 + $0x38] sm:$0xff]  ;;  %v228_v1 = vld [vmem:[%s302_s1 + $0x30] sm:$0xff]  ;;  %v227_v2 = vld [vmem:[%s302_s1 + $0x28] sm:$0xff] }
   0x2   :  { %91 = vmatpush.bf16.msra.mxu0 %v229_v0  ;;  %241 = vmatpush.bf16.msra.mxu1 %v229_v0  ;;  %v226_v3 = vld [vmem:[%s302_s1 + $0x20] sm:$0xff]  ;;  %v225_v4 = vld [vmem:[%s302_s1 + $0x18] sm:$0xff]  ;;  %v224_v5 = vld [vmem:[%s302_s1 + $0x10] sm:$0xff] }
   0x3   :  { %v223_v6 = vld [vmem:[%s302_s1 + $0x8] sm:$0xff]  ;;  %v222_v7 = vld [vmem:[%s302_s1] sm:$0xff] }
   0x4   :  { %v220_v8 = vld [vmem:[%s303_s0] sm:$0xff]  ;;  %v221_v9 = vld [vmem:[%s303_s0 + $0x8] sm:$0xff] }
   0x6   :  { %92 = vmatpush.bf16.msra.mxu0 %v228_v1  ;;  %242 = vmatpush.bf16.msra.mxu1 %v228_v1 }
   0xa   :  { %93 = vmatpush.bf16.msra.mxu0 %v227_v2  ;;  %243 = vmatpush.bf16.msra.mxu1 %v227_v2 }
   0xe   :  { %94 = vmatpush.bf16.msra.mxu0 %v226_v3  ;;  %244 = vmatpush.bf16.msra.mxu1 %v226_v3 }
  0x12   :  { %95 = vmatpush.bf16.msra.mxu0 %v225_v4  ;;  %245 = vmatpush.bf16.msra.mxu1 %v225_v4 }
  0x16   :  { %96 = vmatpush.bf16.msra.mxu0 %v224_v5  ;;  %246 = vmatpush.bf16.msra.mxu1 %v224_v5 }
  0x1a   :  { %97 = vmatpush.bf16.msra.mxu0 %v223_v6  ;;  %247 = vmatpush.bf16.msra.mxu1 %v223_v6 }
  0x1e   :  { %98 = vmatpush.bf16.msra.mxu0 %v222_v7  ;;  %248 = vmatpush.bf16.msra.mxu1 %v222_v7 }
  0x21   :  { %99 = vmatmul.bf16.vlgmr.msra.gmra.mxu0 %v220_v8  ;;  %104 = vmatmul.bf16.vlgmr.msra.gmra.mxu1 %v221_v9 }
  0x9e   :  { %v100_v10 = vpop.f32.mrf.mxu0  ;;  %v105_v11 = vpop.f32.mrf.mxu1 }
  0x9f   :  { %v120_v13 = vmul.f32 %v100_v10, %v100_v10  ;;  %v122_v17 = vmul.f32 %v105_v11, %v105_v11 }
  0xa6   :  { %v102_v12 = vpop.f32.mrf.mxu0  ;;  %v107_v16 = vpop.f32.mrf.mxu1 }
  0xa7   :  { %v110_v14 = vadd.f32 %v102_v12, %v100_v10  ;;  %v121_v15 = vmul.f32 %v102_v12, %v102_v12  ;;  %v123_v21 = vmul.f32 %v107_v16, %v107_v16 }
  0xa9   :  { %v124_v18 = vadd.f32 %v121_v15, %v120_v13  ;;  %v111_v19 = vadd.f32 %v110_v14, %v105_v11 }
  0xab   :  { %v112_v20 = vadd.f32 %v111_v19, %v107_v16  ;;  %v125_v22 = vadd.f32 %v124_v18, %v122_v17 }
  0xad   :  { %v113_v23 = vrot.slane %v112_v20, 4  ;;  %v126_v24 = vadd.f32 %v125_v22, %v123_v21 }
  0xaf   :  { %v114_v25 = vadd.f32 %v113_v23, %v112_v20  ;;  %v127_v26 = vrot.slane %v126_v24, 4 }
  0xb1   :  { %v115_v27 = vrot.slane %v114_v25, 2  ;;  %v128_v28 = vadd.f32 %v127_v26, %v126_v24 }
  0xb3   :  { %v116_v29 = vadd.f32 %v115_v27, %v114_v25  ;;  %v129_v30 = vrot.slane %v128_v28, 2 }
  0xb5   :  { %v117_v31 = vrot.slane %v116_v29, 1  ;;  %v130_v32 = vadd.f32 %v129_v30, %v128_v28 }
  0xb7   :  { %v118_v33 = vadd.f32 %v117_v31, %v116_v29  ;;  %v131_v34 = vrot.slane %v130_v32, 1 }
  0xb9   :  { %v119_v35 = vmul.f32 0.03125, %v118_v33  ;;  %v132_v36 = vadd.f32 %v131_v34, %v130_v32 }
  0xbb   :  { %v133_v37 = vmul.f32 0.03125, %v132_v36  ;;  %v134_v38 = vmul.f32 %v119_v35, %v119_v35  ;;  %v137_v48 = vsub.f32 %v100_v10, %v119_v35  ;;  %v138_v49 = vsub.f32 %v102_v12, %v119_v35 }
  0xbc   :  { %v139_v50 = vsub.f32 %v105_v11, %v119_v35  ;;  %v140_v51 = vsub.f32 %v107_v16, %v119_v35 }
  0xbd   :  { %v135_v39 = vsub.f32 %v133_v37, %v134_v38 }
  0xbf   :  { %v136_v40 = vmax.f32 %v135_v39, 0.0 }
  0xc1   :  { %v141_v41 = vadd.f32 1e-05, %v136_v40 }
  0xc3   :  { %249 = vrsqrt.f32 %v141_v41  ;;  %vm148_vm1 = vweird.f32 %v141_v41 }
  0xc9   :  { %v250_v42 = vpop.eup %249 }
  0xca   :  { %v143_v43 = vmul.f32 %v250_v42, %v141_v41  ;;  %vm149_vm0 = vweird.f32 %v250_v42 }
  0xcb   :  { %vm150_vm2 = vmor %vm148_vm1, %vm149_vm0 }
  0xcc   :  { %v144_v44 = vmul.f32 %v250_v42, %v143_v43 }
  0xce   :  { %v145_v45 = vmul.f32 0.5, %v144_v44 }
  0xd0   :  { %v146_v46 = vsub.f32 1.5, %v145_v45 }
  0xd2   :  { %v147_v47 = vmul.f32 %v250_v42, %v146_v46 }
  0xd4   :  { %v151_v52 = vsel %vm150_vm2, %v250_v42, %v147_v47 }
  0xd5   :  { %v152_v53 = vmul.f32 %v151_v52, %v137_v48  ;;  %v153_v54 = vmul.f32 %v151_v52, %v138_v49  ;;  %v154_v55 = vmul.f32 %v151_v52, %v139_v50  ;;  %v155_v56 = vmul.f32 %v151_v52, %v140_v51 }
  0xd7   :  { %vm156_vm3 = vcmp.gt.f32.partialorder %v152_v53, 0.0  ;;  %vm157_vm4 = vcmp.gt.f32.partialorder %v153_v54, 0.0  ;;  %vm158_vm5 = vcmp.gt.f32.partialorder %v154_v55, 0.0  ;;  %vm159_vm6 = vcmp.gt.f32.partialorder %v155_v56, 0.0 }
  0xd8   :  { %v160_v57 = vmul.f32 0.2, %v152_v53  ;;  %v161_v58 = vmul.f32 0.2, %v153_v54  ;;  %v162_v59 = vmul.f32 0.2, %v154_v55 }
  0xd9   :  { %v163_v60 = vmul.f32 0.2, %v155_v56 }
  0xda   :  { %v164_v61 = vsel %vm156_vm3, %v152_v53, %v160_v57  ;;  %v165_v62 = vsel %vm157_vm4, %v153_v54, %v161_v58  ;;  %v166_v63 = vsel %vm158_vm5, %v154_v55, %v162_v59 }
  0xdb   :  { %v167_v0 = vsel %vm159_vm6, %v155_v56, %v163_v60  ;;  %v233_v1 = vpack.c.bf16 %v165_v62, %v164_v61 }
  0xdc   :  { %v238_v2 = vpack.c.bf16 %v167_v0, %v166_v63 }
  0xdd   :  { %234 = vst [vmem:[%s304_s2] sm:$0xff] %v233_v1  }
  0xde   :  { %240 = vst [vmem:[%s304_s2 + $0x8] sm:$0xff] %v238_v2  }

// kernel: _lambda_.5
= control target key start
LH: loop header
LB: loop body
LE: loop exit
PB: predicated region body
PF: predicated region fallthrough
CT: control target
= control target key end

     0   :  { %s404_s1 = inlined_call_operand.vmem [shape: bf16[256,128], index: 1, kind: input, shape index: {}]   ;;  %s405_s0 = inlined_call_operand.vmem [shape: bf16[16,256], index: 0, kind: input, shape index: {}]   ;;  %s406_s2 = inlined_call_operand.vmem [shape: f32[16,128], index: 2, kind: output, shape index: {}]  }
   0x1   :  { %v306_v0 = vld [vmem:[%s404_s1 + $0x38] sm:$0xff]  ;;  %v305_v2 = vld [vmem:[%s404_s1 + $0x30] sm:$0xff]  ;;  %v304_v4 = vld [vmem:[%s404_s1 + $0x28] sm:$0xff] }
   0x2   :  { %v314_v1 = vld [vmem:[%s404_s1 + $0x78] sm:$0xff]  ;;  %151 = vmatpush.bf16.msra.mxu0 %v306_v0  ;;  %v313_v3 = vld [vmem:[%s404_s1 + $0x70] sm:$0xff]  ;;  %v312_v5 = vld [vmem:[%s404_s1 + $0x68] sm:$0xff] }
   0x3   :  { %165 = vmatpush.bf16.msra.mxu1 %v314_v1  ;;  %v303_v6 = vld [vmem:[%s404_s1 + $0x20] sm:$0xff]  ;;  %v302_v8 = vld [vmem:[%s404_s1 + $0x18] sm:$0xff]  ;;  %v301_v10 = vld [vmem:[%s404_s1 + $0x10] sm:$0xff] }
   0x4   :  { %v311_v7 = vld [vmem:[%s404_s1 + $0x60] sm:$0xff]  ;;  %v310_v9 = vld [vmem:[%s404_s1 + $0x58] sm:$0xff]  ;;  %v309_v11 = vld [vmem:[%s404_s1 + $0x50] sm:$0xff] }
   0x5   :  { %v300_v12 = vld [vmem:[%s404_s1 + $0x8] sm:$0xff]  ;;  %v299_v14 = vld [vmem:[%s404_s1] sm:$0xff] }
   0x6   :  { %152 = vmatpush.bf16.msra.mxu0 %v305_v2  ;;  %v308_v13 = vld [vmem:[%s404_s1 + $0x48] sm:$0xff]  ;;  %v307_v15 = vld [vmem:[%s404_s1 + $0x40] sm:$0xff] }
   0x7   :  { %166 = vmatpush.bf16.msra.mxu1 %v313_v3  ;;  %v225_v16 = vld [vmem:[%s405_s0] sm:$0xf]  ;;  %v298_v17 = vld [vmem:[%s405_s0 + $0x4] sm:$0xf0]  ;;  %v297_v18 = vld [vmem:[%s405_s0 + $0x4] sm:$0xf] }
   0x8   :  { %v227_v19 = vld [vmem:[%s405_s0 + $0x8] sm:$0xf0]  ;;  %v226_v20 = vor.u32 %v298_v17, %v225_v16 }
   0x9   :  { %v230_v21 = vor.u32 %v297_v18, %v227_v19 }
   0xa   :  { %153 = vmatpush.bf16.msra.mxu0 %v304_v4 }
   0xb   :  { %167 = vmatpush.bf16.msra.mxu1 %v312_v5 }
   0xe   :  { %154 = vmatpush.bf16.msra.mxu0 %v303_v6 }
   0xf   :  { %168 = vmatpush.bf16.msra.mxu1 %v311_v7 }
  0x12   :  { %155 = vmatpush.bf16.msra.mxu0 %v302_v8 }
  0x13   :  { %169 = vmatpush.bf16.msra.mxu1 %v310_v9 }
  0x16   :  { %156 = vmatpush.bf16.msra.mxu0 %v301_v10 }
  0x17   :  { %170 = vmatpush.bf16.msra.mxu1 %v309_v11 }
  0x1a   :  { %157 = vmatpush.bf16.msra.mxu0 %v300_v12 }
  0x1b   :  { %171 = vmatpush.bf16.msra.mxu1 %v308_v13 }
  0x1e   :  { %158 = vmatpush.bf16.msra.mxu0 %v299_v14 }
  0x1f   :  { %172 = vmatpush.bf16.msra.mxu1 %v307_v15 }
  0x21   :  { %159 = vmatmul.bf16.vlgmr.msra.gmra.mxu0 %v226_v20 }
  0x22   :  { %173 = vmatmul.bf16.vlgmr.msra.gmra.mxu1 %v230_v21 }
  0x9e   :  { %v160_v22 = vpop.f32.mrf.mxu0 }
  0x9f   :  { %v174_v23 = vpop.f32.mrf.mxu1 }
  0xa0   :  { %v175_v24 = vadd.f32 %v174_v23, %v160_v22 }
  0xa2   :  { %v295_v25 = vmul.f32 -1.442695, %v175_v24 }
  0xa4   :  { %315 = vpow2.f32 %v295_v25 }
  0xa6   :  { %v162_v26 = vpop.f32.mrf.mxu0 }
  0xa7   :  { %v176_v27 = vpop.f32.mrf.mxu1 }
  0xa8   :  { %v177_v28 = vadd.f32 %v176_v27, %v162_v26 }
  0xaa   :  { %v316_v29 = vpop.eup %315  ;;  %v296_v30 = vmul.f32 -1.442695, %v177_v28 }
  0xab   :  { %v185_v31 = vadd.f32 1.0, %v316_v29 }
  0xac   :  { %317 = vpow2.f32 %v296_v30 }
  0xad   :  { %319 = vrcp.f32 %v185_v31  ;;  %v198_v37 = vand.u32 2147483648, %v185_v31  ;;  %v196_v39 = vand.u32 2147483647, %v185_v31  ;;  %vm192_vm1 = vweird.f32 %v185_v31 }
  0xaf   :  { %v199_v42 = vor.u32 1.1754944e-38, %v198_v37  ;;  %vm197_vm3 = vcmp.eq.f32.partialorder %v196_v39, 8.507059e+37 }
  0xb2   :  { %v318_v32 = vpop.eup %317 }
  0xb3   :  { %v320_v33 = vpop.eup %319  ;;  %v186_v34 = vadd.f32 1.0, %v318_v32 }
  0xb4   :  { %v188_v35 = vmul.f32 %v320_v33, %v185_v31  ;;  %vm193_vm0 = vweird.f32 %v320_v33 }
  0xb5   :  { %321 = vrcp.f32 %v186_v34  ;;  %vm194_vm2 = vmor %vm192_vm1, %vm193_vm0  ;;  %v213_v47 = vand.u32 2147483648, %v186_v34  ;;  %v211_v49 = vand.u32 2147483647, %v186_v34  ;;  %vm207_vm5 = vweird.f32 %v186_v34 }
  0xb6   :  { %v189_v36 = vsub.f32 1.0, %v188_v35 }
  0xb7   :  { %v214_v51 = vor.u32 1.1754944e-38, %v213_v47  ;;  %vm212_vm7 = vcmp.eq.f32.partialorder %v211_v49, 8.507059e+37 }
  0xb8   :  { %v190_v38 = vmul.f32 %v320_v33, %v189_v36 }
  0xba   :  { %v191_v40 = vadd.f32 %v320_v33, %v190_v38 }
  0xbb   :  { %v322_v41 = vpop.eup %321 }
  0xbc   :  { %v195_v43 = vsel %vm194_vm2, %v320_v33, %v191_v40  ;;  %v203_v44 = vmul.f32 %v322_v41, %v186_v34  ;;  %vm208_vm4 = vweird.f32 %v322_v41 }
  0xbd   :  { %v200_v45 = vsel %vm197_vm3, %v199_v42, %v195_v43  ;;  %vm209_vm6 = vmor %vm207_vm5, %vm208_vm4 }
  0xbe   :  { %217 = vst [vmem:[%s406_s2] sm:$0xff] %v200_v45  ;;  %v204_v46 = vsub.f32 1.0, %v203_v44 }
  0xc0   :  { %v205_v48 = vmul.f32 %v322_v41, %v204_v46 }
  0xc2   :  { %v206_v50 = vadd.f32 %v322_v41, %v205_v48 }
  0xc4   :  { %v210_v52 = vsel %vm209_vm6, %v322_v41, %v206_v50 }
  0xc5   :  { %v215_v53 = vsel %vm212_vm7, %v214_v51, %v210_v52 }
  0xc6   :  { %218 = vst [vmem:[%s406_s2 + $0x8] sm:$0xff] %v215_v53 }

</bundles_post_ra>
